<compile_context>
chip_gen: v7x
topology: tpu7x:2x2x1
jax: 0.10.0
libtpu: 0.0.40
codegen_flags: <defaults>
</compile_context>

<pallas_src>
import functools

import jax
import jax.numpy as jnp
from jax.experimental import pallas as pl
from jax.experimental.pallas import tpu as pltpu

_NEG_FILL = -1e30  # finite "minus infinity" used for vocab / row padding


def _ce_kernel(y_ref, t_ref, out_ref, m_ref, l_ref, tgt_ref, *, v_tile):
    """Online cross-entropy over one (row-tile, vocab-tile) block."""
    j = pl.program_id(1)  # vocab (reduction) axis, last in the grid

    @pl.when(j == 0)
    def _():
        m_ref[...] = jnp.full_like(m_ref, _NEG_FILL)
        l_ref[...] = jnp.zeros_like(l_ref)
        tgt_ref[...] = jnp.zeros_like(tgt_ref)

    logits = y_ref[...].astype(jnp.float32)            # (TM, TV) f32
    tgt = t_ref[...]                                    # (TM, 1) int32

    # Online (flash-style) logsumexp across vocab blocks.  Padded vocab
    # columns were filled with _NEG_FILL wrapper-side, so they never win the
    # max and their exp underflows to 0 -- no explicit column mask needed.
    m_prev = m_ref[...]
    m_blk = jnp.max(logits, axis=-1, keepdims=True)
    m_new = jnp.maximum(m_prev, m_blk)
    a = jnp.exp(m_prev - m_new)
    p_sum = jnp.sum(jnp.exp(logits - m_new), axis=-1, keepdims=True)
    l_ref[...] = a * l_ref[...] + p_sum
    m_ref[...] = m_new

    # Target-logit gather via select on a global column iota (no one-hot).
    col = jax.lax.broadcasted_iota(jnp.int32, logits.shape, 1) + j * v_tile
    tgt_ref[...] += jnp.sum(
        jnp.where(col == tgt, logits, 0.0), axis=-1, keepdims=True)

    @pl.when(j == pl.num_programs(1) - 1)
    def _():
        lse = jnp.log(l_ref[...]) + m_ref[...]
        out_ref[...] = lse - tgt_ref[...]               # per-row loss (TM, 1)


def _round_up(x, m):
    return (x + m - 1) // m * m


def _pick_tiles(n_rows, v, itemsize, vmem_budget=24 << 20):
    """Choose (row_tile, vocab_tile, padded_vocab) from a VMEM budget.

    Budget covers the double-buffered logits block (2 * TM * TV * itemsize),
    conservative enough for v7x's 64 MiB VMEM while still giving large,
    (8,128)-aligned blocks on v5e/v6e.
    """
    if v <= 8192:
        tv, v_pad = v, v            # single vocab block (block == full dim)
    else:
        tv = 8192                   # lane-dense vocab tile
        v_pad = _round_up(v, tv)
    tm = vmem_budget // (2 * tv * max(int(itemsize), 1))
    tm = max(8, min(512, (tm // 8) * 8))
    tm = min(tm, _round_up(n_rows, 8))
    return tm, tv, v_pad


def seq_loss(y, targets, *, ignore_index=-100):
    """SeqLoss forward with loss = CrossEntropyLoss(reduction='mean').

    y:       (B, T, V) float (f32 or bf16)
    targets: (B, T)    int  (ignore_index entries excluded from the mean)
    returns: scalar f32 mean loss
    """
    if targets is None:
        return None

    v = y.shape[-1]
    y2 = y.reshape(-1, v)                               # (N, V)
    t2 = targets.reshape(-1).astype(jnp.int32)          # (N,)
    n = y2.shape[0]

    tm, tv, v_pad = _pick_tiles(n, v, jnp.dtype(y2.dtype).itemsize)
    n_pad = pl.cdiv(n, tm) * tm

    # Pad rows/vocab; fill logits with a large negative (never affects the
    # running max / exp-sum) and mark padded rows as ignored targets.
    y_p = jnp.pad(y2, ((0, n_pad - n), (0, v_pad - v)),
                  constant_values=_NEG_FILL)
    t_p = jnp.pad(t2, (0, n_pad - n),
                  constant_values=ignore_index).reshape(-1, 1)

    grid = (n_pad // tm, v_pad // tv)

    per_row = pl.pallas_call(
        functools.partial(_ce_kernel, v_tile=tv),
        out_shape=jax.ShapeDtypeStruct((n_pad, 1), jnp.float32),
        grid_spec=pltpu.PrefetchScalarGridSpec(
            num_scalar_prefetch=0,
            grid=grid,
            in_specs=[
                pl.BlockSpec((tm, tv), lambda i, j: (i, j)),   # logits
                pl.BlockSpec((tm, 1), lambda i, j: (i, 0)),    # targets
            ],
            out_specs=pl.BlockSpec((tm, 1), lambda i, j: (i, 0)),
            scratch_shapes=[pltpu.VMEM((tm, 1), jnp.float32)] * 3,  # m, l, tgt
        ),
        compiler_params=pltpu.CompilerParams(
            dimension_semantics=("parallel", "arbitrary"),
            vmem_limit_bytes=48 * 1024 * 1024),
        cost_estimate=pl.CostEstimate(
            flops=5 * n_pad * v_pad,
            transcendentals=n_pad * v_pad,
            bytes_accessed=(y_p.size * jnp.dtype(y_p.dtype).itemsize
                            + t_p.size * 4 + n_pad * 4)),
    )(y_p, t_p)

    per_row = per_row[:, 0]
    valid = t_p[:, 0] != ignore_index
    loss_sum = jnp.sum(jnp.where(valid, per_row, 0.0))
    count = jnp.sum(valid.astype(jnp.float32))
    return loss_sum / count


def _reference(y, targets, ignore_index=-100):
    """Pure-JAX reference: CrossEntropyLoss(mean) over flattened sequence."""
    v = y.shape[-1]
    y2 = y.reshape(-1, v).astype(jnp.float32)
    t2 = targets.reshape(-1)
    valid = t2 != ignore_index
    logz = jax.nn.logsumexp(y2, axis=-1)
    safe_t = jnp.where(valid, t2, 0)
    tgt = jnp.take_along_axis(y2, safe_t[:, None], axis=-1)[:, 0]
    per = logz - tgt
    return jnp.sum(jnp.where(valid, per, 0.0)) / jnp.sum(valid)


if __name__ == "__main__":
    # Test 1: small aligned shapes, f32 logits, all targets valid.
    B, T, V = 2, 8, 128
    key = jax.random.PRNGKey(0)
    k1, k2 = jax.random.split(key)
    y = jax.random.normal(k1, (B, T, V), dtype=jnp.float32)
    targets = jax.random.randint(k2, (B, T), 0, V, dtype=jnp.int32)

    loss = seq_loss(y, targets)
    jax.block_until_ready(loss)
    ref = _reference(y, targets)
    assert jnp.allclose(loss, ref, atol=1e-5, rtol=1e-5), (loss, ref)

    # Test 2: odd shapes (row padding), non-128-multiple vocab, bf16 logits,
    # and an ignore_index target -- exercises the masking / mean-denominator
    # fixes.
    B2, T2, V2 = 2, 5, 320
    k3, k4 = jax.random.split(k2)
    y_b = jax.random.normal(k3, (B2, T2, V2), dtype=jnp.bfloat16)
    t_b = jax.random.randint(k4, (B2, T2), 0, V2, dtype=jnp.int32)
    t_b = t_b.at[0, 1].set(-100)  # ignored position
    loss2 = seq_loss(y_b, t_b)
    jax.block_until_ready(loss2)
    ref2 = _reference(y_b, t_b)
    assert jnp.allclose(loss2, ref2, atol=1e-3, rtol=1e-3), (loss2, ref2)

    print("KERNEL_OK")
</pallas_src>

<mosaic_0001>
module attributes {stable_mosaic.version = 11 : i64} {
  func.func @_ce_kernel(%arg0: i32, %arg1: i32, %arg2: memref<16x128xf32, #tpu.memory_space<vmem>>, %arg3: memref<16x1xi32, #tpu.memory_space<vmem>>, %arg4: memref<16x1xf32, #tpu.memory_space<vmem>>, %arg5: memref<16x1xf32, #tpu.memory_space<vmem>>, %arg6: memref<16x1xf32, #tpu.memory_space<vmem>>, %arg7: memref<16x1xf32, #tpu.memory_space<vmem>>) attributes {dimension_semantics = [#tpu.dimension_semantics<parallel>, #tpu.dimension_semantics<arbitrary>], iteration_bounds = array<i64: 1, 1>, scalar_prefetch = 0 : i64, scratch_operands = 3 : i64, tpu.core_type = #tpu.core_type<tc>, window_params = [{transform_indices = @transform_0, window_bounds = array<i64: 16, 128>}, {transform_indices = @transform_1, window_bounds = array<i64: 16, 1>}, {transform_indices = @transform_2, window_bounds = array<i64: 16, 1>}]} {
    %c0_i32 = arith.constant 0 : i32
    %0 = arith.cmpi eq, %arg1, %c0_i32 : i32
    %1 = arith.extui %0 : i1 to i32
    %c0_i32_0 = arith.constant 0 : i32
    %2 = arith.cmpi ne, %1, %c0_i32_0 : i32
    scf.if %2 {
      %cst_21 = arith.constant -1.000000e+30 : f32
      %37 = vector.broadcast %cst_21 : f32 to vector<16x1xf32>
      %c0_22 = arith.constant 0 : index
      %c0_23 = arith.constant 0 : index
      %38 = vector.load %arg5[%c0_22, %c0_23] : memref<16x1xf32, #tpu.memory_space<vmem>>, vector<16x1xf32>
      tpu.vector_store %arg5[%c0_22, %c0_23], %37 {strides = array<i32>} : memref<16x1xf32, #tpu.memory_space<vmem>>, vector<16x1xf32>,
      %cst_24 = arith.constant 0.000000e+00 : f32
      %39 = vector.broadcast %cst_24 : f32 to vector<16x1xf32>
      %c0_25 = arith.constant 0 : index
      %c0_26 = arith.constant 0 : index
      %40 = vector.load %arg6[%c0_25, %c0_26] : memref<16x1xf32, #tpu.memory_space<vmem>>, vector<16x1xf32>
      tpu.vector_store %arg6[%c0_25, %c0_26], %39 {strides = array<i32>} : memref<16x1xf32, #tpu.memory_space<vmem>>, vector<16x1xf32>,
      %cst_27 = arith.constant 0.000000e+00 : f32
      %41 = vector.broadcast %cst_27 : f32 to vector<16x1xf32>
      %c0_28 = arith.constant 0 : index
      %c0_29 = arith.constant 0 : index
      %42 = vector.load %arg7[%c0_28, %c0_29] : memref<16x1xf32, #tpu.memory_space<vmem>>, vector<16x1xf32>
      tpu.vector_store %arg7[%c0_28, %c0_29], %41 {strides = array<i32>} : memref<16x1xf32, #tpu.memory_space<vmem>>, vector<16x1xf32>,
    } else {
    }
    %c0 = arith.constant 0 : index
    %c0_1 = arith.constant 0 : index
    %3 = vector.load %arg2[%c0, %c0_1] : memref<16x128xf32, #tpu.memory_space<vmem>>, vector<16x128xf32>
    %c0_2 = arith.constant 0 : index
    %c0_3 = arith.constant 0 : index
    %4 = vector.load %arg3[%c0_2, %c0_3] : memref<16x1xi32, #tpu.memory_space<vmem>>, vector<16x1xi32>
    %c0_4 = arith.constant 0 : index
    %c0_5 = arith.constant 0 : index
    %5 = vector.load %arg5[%c0_4, %c0_5] : memref<16x1xf32, #tpu.memory_space<vmem>>, vector<16x1xf32>
    %cst = arith.constant dense<0xFF800000> : vector<16xf32>
    %6 = vector.multi_reduction <maximumf>, %3, %cst [1] : vector<16x128xf32> to vector<16xf32>
    %7 = vector.shape_cast %6 : vector<16xf32> to vector<16x1xf32>
    %8 = arith.maximumf %5, %7 : vector<16x1xf32>
    %9 = arith.subf %5, %8 : vector<16x1xf32>
    %10 = math.exp %9 : vector<16x1xf32>
    %11 = vector.broadcast %8 : vector<16x1xf32> to vector<16x128xf32>
    %12 = arith.subf %3, %11 : vector<16x128xf32>
    %13 = math.exp %12 : vector<16x128xf32>
    %cst_6 = arith.constant dense<0.000000e+00> : vector<16xf32>
    %14 = vector.multi_reduction <add>, %13, %cst_6 [1] : vector<16x128xf32> to vector<16xf32>
    %15 = vector.shape_cast %14 : vector<16xf32> to vector<16x1xf32>
    %c0_7 = arith.constant 0 : index
    %c0_8 = arith.constant 0 : index
    %16 = vector.load %arg6[%c0_7, %c0_8] : memref<16x1xf32, #tpu.memory_space<vmem>>, vector<16x1xf32>
    %17 = arith.mulf %10, %16 : vector<16x1xf32>
    %18 = arith.addf %17, %15 : vector<16x1xf32>
    %c0_9 = arith.constant 0 : index
    %c0_10 = arith.constant 0 : index
    %19 = vector.load %arg6[%c0_9, %c0_10] : memref<16x1xf32, #tpu.memory_space<vmem>>, vector<16x1xf32>
    tpu.vector_store %arg6[%c0_9, %c0_10], %18 {strides = array<i32>} : memref<16x1xf32, #tpu.memory_space<vmem>>, vector<16x1xf32>,
    %c0_11 = arith.constant 0 : index
    %c0_12 = arith.constant 0 : index
    %20 = vector.load %arg5[%c0_11, %c0_12] : memref<16x1xf32, #tpu.memory_space<vmem>>, vector<16x1xf32>
    tpu.vector_store %arg5[%c0_11, %c0_12], %8 {strides = array<i32>} : memref<16x1xf32, #tpu.memory_space<vmem>>, vector<16x1xf32>,
    %21 = tpu.iota {dimensions = array<i32: 1>} : vector<16x128xi32>
    %c128_i32 = arith.constant 128 : i32
    %22 = arith.muli %arg1, %c128_i32 : i32
    %23 = vector.broadcast %22 : i32 to vector<16x128xi32>
    %24 = arith.addi %21, %23 : vector<16x128xi32>
    %c0_13 = arith.constant 0 : index
    %c0_14 = arith.constant 0 : index
    %25 = vector.load %arg7[%c0_13, %c0_14] : memref<16x1xf32, #tpu.memory_space<vmem>>, vector<16x1xf32>
    %26 = vector.broadcast %4 : vector<16x1xi32> to vector<16x128xi32>
    %27 = arith.cmpi eq, %24, %26 : vector<16x128xi32>
    %cst_15 = arith.constant 0.000000e+00 : f32
    %28 = vector.broadcast %cst_15 : f32 to vector<16x128xf32>
    %29 = arith.select %27, %3, %28 : vector<16x128xi1>, vector<16x128xf32>
    %cst_16 = arith.constant dense<0.000000e+00> : vector<16xf32>
    %30 = vector.multi_reduction <add>, %29, %cst_16 [1] : vector<16x128xf32> to vector<16xf32>
    %31 = vector.shape_cast %30 : vector<16xf32> to vector<16x1xf32>
    %32 = arith.addf %25, %31 : vector<16x1xf32>
    %c0_17 = arith.constant 0 : index
    %c0_18 = arith.constant 0 : index
    %33 = vector.load %arg7[%c0_17, %c0_18] : memref<16x1xf32, #tpu.memory_space<vmem>>, vector<16x1xf32>
    tpu.vector_store %arg7[%c0_17, %c0_18], %32 {strides = array<i32>} : memref<16x1xf32, #tpu.memory_space<vmem>>, vector<16x1xf32>,
    %c0_i32_19 = arith.constant 0 : i32
    %34 = arith.cmpi eq, %arg1, %c0_i32_19 : i32
    %35 = arith.extui %34 : i1 to i32
    %c0_i32_20 = arith.constant 0 : i32
    %36 = arith.cmpi ne, %35, %c0_i32_20 : i32
    scf.if %36 {
      %c0_21 = arith.constant 0 : index
      %c0_22 = arith.constant 0 : index
      %37 = vector.load %arg6[%c0_21, %c0_22] : memref<16x1xf32, #tpu.memory_space<vmem>>, vector<16x1xf32>
      %38 = math.log %37 : vector<16x1xf32>
      %c0_23 = arith.constant 0 : index
      %c0_24 = arith.constant 0 : index
      %39 = vector.load %arg5[%c0_23, %c0_24] : memref<16x1xf32, #tpu.memory_space<vmem>>, vector<16x1xf32>
      %40 = arith.addf %38, %39 : vector<16x1xf32>
      %c0_25 = arith.constant 0 : index
      %c0_26 = arith.constant 0 : index
      %41 = vector.load %arg7[%c0_25, %c0_26] : memref<16x1xf32, #tpu.memory_space<vmem>>, vector<16x1xf32>
      %42 = arith.subf %40, %41 : vector<16x1xf32>
      %c0_27 = arith.constant 0 : index
      %c0_28 = arith.constant 0 : index
      %43 = vector.load %arg4[%c0_27, %c0_28] : memref<16x1xf32, #tpu.memory_space<vmem>>, vector<16x1xf32>
      tpu.vector_store %arg4[%c0_27, %c0_28], %42 {strides = array<i32>} : memref<16x1xf32, #tpu.memory_space<vmem>>, vector<16x1xf32>,
    } else {
    }
    return
  }
  func.func @transform_0(%arg0: i32, %arg1: i32) -> (i32, i32) {
    %c0_i32 = arith.constant 0 : i32
    return %arg0, %arg1 : i32, i32
  }
  func.func @transform_1(%arg0: i32, %arg1: i32) -> (i32, i32) {
    %c0_i32 = arith.constant 0 : i32
    %c0_i32_0 = arith.constant 0 : i32
    return %arg0, %c0_i32 : i32, i32
  }
  func.func @transform_2(%arg0: i32, %arg1: i32) -> (i32, i32) {
    %c0_i32 = arith.constant 0 : i32
    %c0_i32_0 = arith.constant 0 : i32
    return %arg0, %c0_i32 : i32, i32
  }
}

</mosaic_0001>

<bundles_post_ra>
// kernel: tpu_custom_call.1
= control target key start
LH: loop header
LB: loop body
LE: loop exit
PB: predicated region body
PF: predicated region fallthrough
CT: control target
= control target key end

     0   :  { %vm15_vm0 = vcmask 7168   ;;  %v136_v1 = vmov -1e+30   ;;  %v137_v3 = vmov 0   ;;  %v138_v4 = vmov 0.0   ;;  %s186_s0 = inlined_call_operand.vmem [shape: f32[16,128], index: 0, kind: input, shape index: {}]   ;;  %s187_s1 = inlined_call_operand.vmem [shape: s32[16,1], index: 1, kind: input, shape index: {}]   ;;  %s188_s2 = inlined_call_operand.vmem [shape: f32[16,1], index: 2, kind: output, shape index: {}]  }
   0x1   :  { %v22_v0 = vld [vmem:[%s186_s0] sm:$0xff]  ;;  %16 = vst.msk [vmem:[#allocation2] sm:$0xff] %vm15_vm0, %v136_v1  ;;  %17 = vst.msk [vmem:[#allocation2 + $0x8] sm:$0xff] %vm15_vm0, %v136_v1  ;;  %v23_v2 = vld [vmem:[%s186_s0 + $0x8] sm:$0xff]  ;;  %122 = vset.pattern.permute.xlu1 %v137_v3  ;;  %123 = vset.pattern.permute.xlu0 %v137_v3  ;;  %v71_v15 = vlaneseq }
   0x2   :  { %28 = vmax.xlane.f32.xlu0 %v22_v0  ;;  %18 = vst.msk [vmem:[#allocation3] sm:$0xff] %vm15_vm0, %v138_v4  ;;  %19 = vst.msk [vmem:[#allocation3 + $0x8] sm:$0xff] %vm15_vm0, %v138_v4  ;;  %v24_v5 = vld [vmem:[%s187_s1] sm:$0xff]  ;;  %v25_v14 = vld [vmem:[%s187_s1 + $0x8] sm:$0xff] }
   0x3   :  { %20 = vst.msk [vmem:[#allocation4] sm:$0xff] %vm15_vm0, %v138_v4  ;;  %21 = vst.msk [vmem:[#allocation4 + $0x8] sm:$0xff] %vm15_vm0, %v138_v4  ;;  %v72_v16 = vand.u32 127, %v71_v15 }
   0x6   :  { %30 = vmax.xlane.f32.xlu0 %v23_v2 }
   0x8   :  { %v26_v6 = vld [vmem:[#allocation2] sm:$0xff]  ;;  %v27_v9 = vld [vmem:[#allocation2 + $0x8] sm:$0xff] }
   0x9   :  { %v60_v35 = vld [vmem:[#allocation3] sm:$0xff]  ;;  %v61_v39 = vld [vmem:[#allocation3 + $0x8] sm:$0xff] }
   0xa   :  { %v76_v29 = vld [vmem:[#allocation4] sm:$0xff]  ;;  %v77_v44 = vld [vmem:[#allocation4 + $0x8] sm:$0xff] }
  0x1c   :  { %79 = vperm.xlu0 %123, %v24_v5  }
  0x8f   :  { %v29_v7 = vpop.xlane.xlu0 %28 }
  0x90   :  { %v32_v8 = vmax.f32 %v26_v6, %v29_v7 }
  0x92   :  { %v34_v10 = vsub.f32 %v26_v6, %v32_v8  ;;  %69 = vst.msk [vmem:[#allocation2] sm:$0xff] %vm15_vm0, %v32_v8  ;;  %42 = vperm.xlu1 %122, %v32_v8  }
  0x93   :  { %v31_v11 = vpop.xlane.xlu0 %30 }
  0x94   :  { %v33_v12 = vmax.f32 %v27_v9, %v31_v11  ;;  %v36_v32 = vmul.f32 1.442695, %v34_v10 }
  0x96   :  { %v35_v13 = vsub.f32 %v27_v9, %v33_v12  ;;  %70 = vst.msk [vmem:[#allocation2 + $0x8] sm:$0xff] %vm15_vm0, %v33_v12  ;;  %47 = vperm.xlu1 %122, %v33_v12  }
  0x98   :  { %v38_v33 = vmul.f32 1.442695, %v35_v13 }
  0x99   :  { %v105_v51 = vld [vmem:[#allocation2] sm:$0xff] }
  0x9a   :  { %82 = vperm.xlu1 %122, %v25_v14  }
  0x9b   :  { %v80_v17 = vpop.permute.xlu0 %79 }
  0x9c   :  { %vm84_vm1 = vcmp.eq.s32.totalorder %v72_v16, %v80_v17 }
  0x9d   :  { %v86_v18 = vsel %vm84_vm1, %v22_v0, 0.0  ;;  %v106_v57 = vld [vmem:[#allocation2 + $0x8] sm:$0xff] }
  0x9e   :  { %88 = vadd.xlane.f32.xlu0 %v86_v18 }
 0x111   :  { %v43_v19 = vpop.permute.xlu1 %42 }
 0x112   :  { %v50_v20 = vsub.f32 %v22_v0, %v43_v19 }
 0x114   :  { %v52_v21 = vmul.f32 1.442695, %v50_v20 }
 0x115   :  { %v48_v22 = vpop.permute.xlu1 %47 }
 0x116   :  { %124 = vpow2.f32 %v52_v21  ;;  %v51_v23 = vsub.f32 %v23_v2, %v48_v22 }
 0x118   :  { %v54_v24 = vmul.f32 1.442695, %v51_v23 }
 0x119   :  { %v83_v26 = vpop.permute.xlu1 %82 }
 0x11a   :  { %126 = vpow2.f32 %v54_v24  ;;  %vm85_vm2 = vcmp.eq.s32.totalorder %v72_v16, %v83_v26 }
 0x11b   :  { %v87_v28 = vsel %vm85_vm2, %v23_v2, 0.0  ;;  %128 = vpow2.f32 %v36_v32 }
 0x11c   :  { %130 = vpow2.f32 %v38_v33 }
 0x120   :  { %v125_v25 = vpop.eup %124 }
 0x121   :  { %56 = vadd.xlane.f32.xlu1 %v125_v25 }
 0x124   :  { %v127_v27 = vpop.eup %126 }
 0x125   :  { %58 = vadd.xlane.f32.xlu1 %v127_v27  ;;  %v129_v34 = vpop.eup %128 }
 0x126   :  { %v62_v36 = vmul.f32 %v129_v34, %v60_v35  ;;  %v131_v37 = vpop.eup %130 }
 0x127   :  { %v63_v41 = vmul.f32 %v131_v37, %v61_v39 }
 0x129   :  { %90 = vadd.xlane.f32.xlu1 %v87_v28 }
 0x12b   :  { %v89_v30 = vpop.xlane.xlu0 %88 }
 0x12c   :  { %v92_v31 = vadd.f32 %v89_v30, %v76_v29 }
 0x12e   :  { %94 = vst.msk [vmem:[#allocation4] sm:$0xff] %vm15_vm0, %v92_v31 }
 0x135   :  { %v109_v52 = vld [vmem:[#allocation4] sm:$0xff] }
 0x1ae   :  { %v57_v38 = vpop.xlane.xlu1 %56 }
 0x1af   :  { %v64_v40 = vadd.f32 %v62_v36, %v57_v38 }
 0x1b1   :  { %67 = vst.msk [vmem:[#allocation3] sm:$0xff] %vm15_vm0, %v64_v40 }
 0x1b2   :  { %v59_v42 = vpop.xlane.xlu1 %58 }
 0x1b3   :  { %v65_v43 = vadd.f32 %v63_v41, %v59_v42 }
 0x1b5   :  { %68 = vst.msk [vmem:[#allocation3 + $0x8] sm:$0xff] %vm15_vm0, %v65_v43 }
 0x1b6   :  { %v91_v45 = vpop.xlane.xlu1 %90 }
 0x1b7   :  { %v93_v46 = vadd.f32 %v91_v45, %v77_v44 }
 0x1b8   :  { %v99_v47 = vld [vmem:[#allocation3] sm:$0xff] }
 0x1b9   :  { %132 = vlog2.f32 %v99_v47  ;;  %95 = vst.msk [vmem:[#allocation4 + $0x8] sm:$0xff] %vm15_vm0, %v93_v46 }
 0x1bc   :  { %v100_v48 = vld [vmem:[#allocation3 + $0x8] sm:$0xff] }
 0x1bd   :  { %134 = vlog2.f32 %v100_v48 }
 0x1c0   :  { %v110_v59 = vld [vmem:[#allocation4 + $0x8] sm:$0xff] }
 0x1c3   :  { %v133_v49 = vpop.eup %132 }
 0x1c4   :  { %v102_v50 = vmul.f32 0.6931472, %v133_v49 }
 0x1c6   :  { %v107_v53 = vadd.f32 %v105_v51, %v102_v50 }
 0x1c7   :  { %v135_v54 = vpop.eup %134 }
 0x1c8   :  { %v104_v55 = vmul.f32 0.6931472, %v135_v54  ;;  %v111_v56 = vsub.f32 %v107_v53, %v109_v52 }
 0x1ca   :  { %v108_v58 = vadd.f32 %v106_v57, %v104_v55  ;;  %113 = vst.msk [vmem:[%s188_s2] sm:$0xff] %vm15_vm0, %v111_v56 }
 0x1cc   :  { %v112_v60 = vsub.f32 %v108_v58, %v110_v59 }
 0x1ce   :  { %114 = vst.msk [vmem:[%s188_s2 + $0x8] sm:$0xff] %vm15_vm0, %v112_v60 }

</bundles_post_ra>
